<compile_context>
chip_gen: v7x
topology: tpu7x:2x2x1
jax: 0.10.0
libtpu: 0.0.40
codegen_flags: <defaults>
</compile_context>

<pallas_src>
import functools

import jax
import jax.numpy as jnp
from jax.experimental import pallas as pl
from jax.experimental.pallas import tpu as pltpu

LEAKY_SLOPE = 0.01                       # nn.LeakyReLU default
_SINGLE_BLOCK_BYTES = 4 * 1024 * 1024    # below this, run as one whole-array block


def _round_up(x, m):
    return ((x + m - 1) // m) * m


def _pad2(a, row_mult, col_mult):
    r, c = a.shape
    rp, cp = _round_up(r, row_mult), _round_up(c, col_mult)
    if (rp, cp) == (r, c):
        return a
    return jnp.pad(a, ((0, rp - r), (0, cp - c)))


# ----------------------------------------------------------------------------
# Pallas kernels: y = leaky_relu(x @ w + b), bf16 operands, f32 accumulation
# ----------------------------------------------------------------------------
def _dense_lrelu_kernel(x_ref, w_ref, b_ref, o_ref, *, slope):
    y = jnp.dot(x_ref[...], w_ref[...], preferred_element_type=jnp.float32)
    y = y + b_ref[...]                               # (1, N) broadcasts over rows
    o_ref[...] = jnp.maximum(y, slope * y).astype(o_ref.dtype)


def _dense_lrelu_single(x_bf, w_bf, b, slope):
    """Single whole-array block. Shapes are padded to bf16-friendly multiples."""
    M, K = x_bf.shape
    Kp, Np = w_bf.shape                              # already (128,128)-multiples
    Mp = _round_up(M, 16)                            # bf16 sublane packing
    xp = jnp.pad(x_bf, ((0, Mp - M), (0, Kp - K)))   # zero pad -> dot stays exact

    out = pl.pallas_call(
        functools.partial(_dense_lrelu_kernel, slope=slope),
        out_shape=jax.ShapeDtypeStruct((Mp, Np), jnp.float32),
        grid=(1,),
        in_specs=[
            pl.BlockSpec((Mp, Kp), lambda i: (0, 0)),
            pl.BlockSpec((Kp, Np), lambda i: (0, 0)),
            pl.BlockSpec((1, Np), lambda i: (0, 0)),
        ],
        out_specs=pl.BlockSpec((Mp, Np), lambda i: (0, 0)),
        compiler_params=pltpu.CompilerParams(dimension_semantics=("arbitrary",)),
    )(xp, w_bf, b)
    return out[:M, :Np]


def _dense_lrelu_tiled_kernel(x_ref, w_ref, b_ref, o_ref, acc_ref, *, slope):
    @pl.when(pl.program_id(2) == 0)
    def _():
        acc_ref[...] = jnp.zeros_like(acc_ref)

    acc_ref[...] += jnp.dot(x_ref[...], w_ref[...],
                            preferred_element_type=jnp.float32)

    @pl.when(pl.program_id(2) == pl.num_programs(2) - 1)
    def _():
        y = acc_ref[...] + b_ref[...]
        o_ref[...] = jnp.maximum(y, slope * y).astype(o_ref.dtype)


def _dense_lrelu_tiled(x_bf, w_bf, b, slope=LEAKY_SLOPE, tm=256, tn=256, tk=512):
    """Tiled (M,N,K) grid with f32 accumulator scratch; used for non-toy shapes."""
    M, K = x_bf.shape
    Kw, Nw = w_bf.shape
    Mp, Kp, Np = _round_up(M, tm), _round_up(Kw, tk), _round_up(Nw, tn)
    xp = jnp.pad(x_bf, ((0, Mp - M), (0, Kp - K)))
    wp = jnp.pad(w_bf, ((0, Kp - Kw), (0, Np - Nw)))
    bp = jnp.pad(b, ((0, 0), (0, Np - b.shape[1])))

    out = pl.pallas_call(
        functools.partial(_dense_lrelu_tiled_kernel, slope=slope),
        out_shape=jax.ShapeDtypeStruct((Mp, Np), jnp.float32),
        grid_spec=pltpu.PrefetchScalarGridSpec(
            num_scalar_prefetch=0,
            grid=(Mp // tm, Np // tn, Kp // tk),
            in_specs=[
                pl.BlockSpec((tm, tk), lambda i, j, k: (i, k)),
                pl.BlockSpec((tk, tn), lambda i, j, k: (k, j)),
                pl.BlockSpec((1, tn), lambda i, j, k: (0, j)),
            ],
            out_specs=pl.BlockSpec((tm, tn), lambda i, j, k: (i, j)),
            scratch_shapes=[pltpu.VMEM((tm, tn), jnp.float32)],
        ),
        compiler_params=pltpu.CompilerParams(
            dimension_semantics=("parallel", "parallel", "arbitrary"),
            vmem_limit_bytes=32 * 1024 * 1024,   # safe on v5e/v6e/v7x; tiles ~2 MiB
        ),
    )(xp, wp, bp)
    return out[:M, :Nw]


def dense_lrelu(x, w_bf, b, n_true, slope=LEAKY_SLOPE):
    """leaky_relu(x @ w + b); w_bf / b are pre-padded (prepare_params). Returns f32."""
    x_bf = x.astype(jnp.bfloat16)
    M, _ = x.shape
    Kp, Np = w_bf.shape
    footprint = 2 * M * Kp + 2 * Kp * Np + 4 * M * Np
    if footprint <= _SINGLE_BLOCK_BYTES:
        out = _dense_lrelu_single(x_bf, w_bf, b, slope)
    else:
        out = _dense_lrelu_tiled(x_bf, w_bf, b, slope)
    return out[:M, :n_true]


# ----------------------------------------------------------------------------
# im2col glue (plain JAX, fused under jit): NHWC -> (N*Ho*Wo, kh*kw*Cin)
# ----------------------------------------------------------------------------
def _im2col(x_nhwc, k, stride):
    n, h, w, c = x_nhwc.shape
    ho = (h - k) // stride + 1
    wo = (w - k) // stride + 1
    patches = []
    for i in range(k):
        for j in range(k):
            patches.append(
                x_nhwc[:, i:i + stride * ho:stride, j:j + stride * wo:stride, :])
    cols = jnp.stack(patches, axis=3)                 # (N, Ho, Wo, k*k, C)
    cols = cols.reshape(n * ho * wo, k * k * c)       # row order: (kh, kw, C)
    return cols, ho, wo


# ----------------------------------------------------------------------------
# FeatureExtractor forward (jitted)
# ----------------------------------------------------------------------------
@functools.partial(jax.jit, static_argnames=("conv_layers", "fc_out"))
def feature_extractor_forward(inputs_nchw, masks, prepared, *, conv_layers, fc_out):
    del masks  # FeatureExtractor.forward ignores masks (no recurrence)
    x = jnp.transpose(inputs_nchw, (0, 2, 3, 1))      # NCHW -> NHWC (single transpose)
    n = x.shape[0]
    for i, (cout, k, s) in enumerate(conv_layers):
        cols, ho, wo = _im2col(x, k, s)
        y = dense_lrelu(cols, prepared[f"conv_{i}"]["w"],
                        prepared[f"conv_{i}"]["b"], cout)
        x = y.reshape(n, ho, wo, cout)                # NHWC
    x = x.reshape(n, -1)                              # NHWC flatten (fc rows pre-permuted)
    return dense_lrelu(x, prepared["fc_0"]["w"], prepared["fc_0"]["b"], fc_out)


# ----------------------------------------------------------------------------
# Parameters: raw (PyTorch layout) + one-time kernel-ready preparation
# ----------------------------------------------------------------------------
def init_params(key, input_shape, conv_layers, fc_layers):
    params = {}
    cin, h, w = input_shape
    for i, (cout, k, s) in enumerate(conv_layers):
        key, kw_, kb_ = jax.random.split(key, 3)
        params[f"conv_{i}"] = {
            "w": 0.1 * jax.random.normal(kw_, (cout, cin, k, k), jnp.float32),
            "b": 0.1 * jax.random.normal(kb_, (cout,), jnp.float32),
        }
        h = (h - k) // s + 1
        w = (w - k) // s + 1
        cin = cout
    flat = cin * h * w
    key, kw_, kb_ = jax.random.split(key, 3)
    params["fc_0"] = {
        "w": 0.1 * jax.random.normal(kw_, (flat, fc_layers[0]), jnp.float32),
        "b": 0.1 * jax.random.normal(kb_, (fc_layers[0],), jnp.float32),
    }
    return params


def prepare_params(raw, input_shape, conv_layers):
    """One-time prep: matmul layout, NHWC fc permutation, (128,128) pad, bf16 cast."""
    prepared = {}
    cin, h, w = input_shape
    for i, (cout, k, s) in enumerate(conv_layers):
        wm = jnp.transpose(raw[f"conv_{i}"]["w"], (2, 3, 1, 0)).reshape(k * k * cin, cout)
        prepared[f"conv_{i}"] = {
            "w": _pad2(wm.astype(jnp.bfloat16), 128, 128),
            "b": _pad2(raw[f"conv_{i}"]["b"].astype(jnp.float32).reshape(1, cout), 1, 128),
        }
        h = (h - k) // s + 1
        w = (w - k) // s + 1
        cin = cout
    fc_w = raw["fc_0"]["w"]
    fc_out = fc_w.shape[1]
    # Permute rows from PyTorch NCHW flatten order to NHWC flatten order (one-time).
    fc_w = fc_w.reshape(cin, h, w, fc_out).transpose(1, 2, 0, 3).reshape(h * w * cin, fc_out)
    prepared["fc_0"] = {
        "w": _pad2(fc_w.astype(jnp.bfloat16), 128, 128),
        "b": _pad2(raw["fc_0"]["b"].astype(jnp.float32).reshape(1, fc_out), 1, 128),
    }
    return prepared


def _reference_forward(x_nchw, raw, conv_layers):
    """Plain-JAX reference mirroring the PyTorch module (f32)."""
    y = x_nchw
    for i, (cout, k, s) in enumerate(conv_layers):
        w = raw[f"conv_{i}"]["w"]
        b = raw[f"conv_{i}"]["b"]
        y = jax.lax.conv_general_dilated(
            y, w, (s, s), "VALID", dimension_numbers=("NCHW", "OIHW", "NCHW"))
        y = y + b[None, :, None, None]
        y = jnp.where(y >= 0, y, LEAKY_SLOPE * y)
    y = y.reshape(y.shape[0], -1)
    y = y @ raw["fc_0"]["w"] + raw["fc_0"]["b"]
    return jnp.where(y >= 0, y, LEAKY_SLOPE * y)


if __name__ == "__main__":
    # Config consistent with the module: input_shape=(4,16,16), conv=[(8,3,2),(16,3,2)], fc=[32]
    input_shape = (4, 16, 16)
    conv_layers = ((8, 3, 2), (16, 3, 2))
    fc_layers = (32,)
    batch = 2

    key = jax.random.PRNGKey(0)
    key, kx, kp, kt1, kt2, kt3 = jax.random.split(key, 6)
    x = jax.random.normal(kx, (batch, *input_shape), jnp.float32)   # NCHW
    masks = jnp.ones((batch, 1), jnp.float32)

    raw = init_params(kp, input_shape, conv_layers, fc_layers)
    prepared = prepare_params(raw, input_shape, conv_layers)        # one-time weight prep
    jax.block_until_ready(prepared)

    out = feature_extractor_forward(x, masks, prepared,
                                    conv_layers=conv_layers, fc_out=fc_layers[0])
    jax.block_until_ready(out)
    assert out.shape == (batch, fc_layers[0]), out.shape

    # Numerical sanity vs. plain-JAX f32 reference (loose tolerance: bf16 matmuls).
    ref = _reference_forward(x, raw, conv_layers)
    assert jnp.allclose(out, ref, rtol=1e-1, atol=1e-1)

    # Exercise the tiled (M,N,K) path once on a non-toy shape and check it.
    xa = jax.random.normal(kt1, (300, 400), jnp.float32).astype(jnp.bfloat16)
    wa = jax.random.normal(kt2, (400, 260), jnp.float32).astype(jnp.bfloat16)
    ba = jax.random.normal(kt3, (1, 260), jnp.float32)
    got = _dense_lrelu_tiled(xa, wa, ba)
    jax.block_until_ready(got)
    ref_t = jnp.dot(xa.astype(jnp.float32), wa.astype(jnp.float32)) + ba
    ref_t = jnp.maximum(ref_t, LEAKY_SLOPE * ref_t)
    assert got.shape == (300, 260), got.shape
    assert jnp.allclose(got, ref_t, rtol=2e-2, atol=2e-2)

    print("KERNEL_OK")
</pallas_src>

<mosaic_0001>
module attributes {stable_mosaic.version = 11 : i64} {
  func.func @_dense_lrelu_kernel(%arg0: i32, %arg1: memref<112x128xbf16, #tpu.memory_space<vmem>>, %arg2: memref<128x128xbf16, #tpu.memory_space<vmem>>, %arg3: memref<1x128xf32, #tpu.memory_space<vmem>>, %arg4: memref<112x128xf32, #tpu.memory_space<vmem>>) attributes {dimension_semantics = [#tpu.dimension_semantics<arbitrary>], iteration_bounds = array<i64: 1>, scalar_prefetch = 0 : i64, scratch_operands = 0 : i64, tpu.core_type = #tpu.core_type<tc>, window_params = [{pipeline_mode = #tpu.pipeline_mode<synchronous>, transform_indices = @transform_0, window_bounds = array<i64: 112, 128>}, {pipeline_mode = #tpu.pipeline_mode<synchronous>, transform_indices = @transform_1, window_bounds = array<i64: 128, 128>}, {pipeline_mode = #tpu.pipeline_mode<synchronous>, transform_indices = @transform_2, window_bounds = array<i64: 1, 128>}, {pipeline_mode = #tpu.pipeline_mode<synchronous>, transform_indices = @transform_3, window_bounds = array<i64: 112, 128>}]} {
    %c0 = arith.constant 0 : index
    %c0_0 = arith.constant 0 : index
    %0 = vector.load %arg1[%c0, %c0_0] : memref<112x128xbf16, #tpu.memory_space<vmem>>, vector<112x128xbf16>
    %c0_1 = arith.constant 0 : index
    %c0_2 = arith.constant 0 : index
    %1 = vector.load %arg2[%c0_1, %c0_2] : memref<128x128xbf16, #tpu.memory_space<vmem>>, vector<128x128xbf16>
    %cst = arith.constant dense<0.000000e+00> : vector<112x128xf32>
    %2 = tpu.matmul %0, %1, %cst {dimension_numbers = #tpu.dot_dimension_numbers<[1], [0], [0], [1], [0, 0, 1, 1], [], []>} : vector<112x128xbf16>, vector<128x128xbf16>, vector<112x128xf32> -> vector<112x128xf32>
    %c0_3 = arith.constant 0 : index
    %c0_4 = arith.constant 0 : index
    %3 = vector.load %arg3[%c0_3, %c0_4] : memref<1x128xf32, #tpu.memory_space<vmem>>, vector<1x128xf32>
    %4 = vector.broadcast %3 : vector<1x128xf32> to vector<112x128xf32>
    %5 = arith.addf %2, %4 : vector<112x128xf32>
    %cst_5 = arith.constant 0.00999999977 : f32
    %6 = vector.broadcast %cst_5 : f32 to vector<112x128xf32>
    %7 = arith.mulf %6, %5 : vector<112x128xf32>
    %8 = arith.maximumf %5, %7 : vector<112x128xf32>
    %c0_6 = arith.constant 0 : index
    %c0_7 = arith.constant 0 : index
    %9 = vector.load %arg4[%c0_6, %c0_7] : memref<112x128xf32, #tpu.memory_space<vmem>>, vector<112x128xf32>
    tpu.vector_store %arg4[%c0_6, %c0_7], %8 {strides = array<i32>} : memref<112x128xf32, #tpu.memory_space<vmem>>, vector<112x128xf32>,
    return
  }
  func.func @transform_0(%arg0: i32) -> (i32, i32) {
    %c0_i32 = arith.constant 0 : i32
    %c0_i32_0 = arith.constant 0 : i32
    %c0_i32_1 = arith.constant 0 : i32
    return %c0_i32, %c0_i32_0 : i32, i32
  }
  func.func @transform_1(%arg0: i32) -> (i32, i32) {
    %c0_i32 = arith.constant 0 : i32
    %c0_i32_0 = arith.constant 0 : i32
    %c0_i32_1 = arith.constant 0 : i32
    return %c0_i32, %c0_i32_0 : i32, i32
  }
  func.func @transform_2(%arg0: i32) -> (i32, i32) {
    %c0_i32 = arith.constant 0 : i32
    %c0_i32_0 = arith.constant 0 : i32
    %c0_i32_1 = arith.constant 0 : i32
    return %c0_i32, %c0_i32_0 : i32, i32
  }
  func.func @transform_3(%arg0: i32) -> (i32, i32) {
    %c0_i32 = arith.constant 0 : i32
    %c0_i32_0 = arith.constant 0 : i32
    %c0_i32_1 = arith.constant 0 : i32
    return %c0_i32, %c0_i32_0 : i32, i32
  }
}

module attributes {stable_mosaic.version = 11 : i64} {
  func.func @_dense_lrelu_kernel(%arg0: i32, %arg1: memref<32x128xbf16, #tpu.memory_space<vmem>>, %arg2: memref<128x128xbf16, #tpu.memory_space<vmem>>, %arg3: memref<1x128xf32, #tpu.memory_space<vmem>>, %arg4: memref<32x128xf32, #tpu.memory_space<vmem>>) attributes {dimension_semantics = [#tpu.dimension_semantics<arbitrary>], iteration_bounds = array<i64: 1>, scalar_prefetch = 0 : i64, scratch_operands = 0 : i64, tpu.core_type = #tpu.core_type<tc>, window_params = [{pipeline_mode = #tpu.pipeline_mode<synchronous>, transform_indices = @transform_0, window_bounds = array<i64: 32, 128>}, {pipeline_mode = #tpu.pipeline_mode<synchronous>, transform_indices = @transform_1, window_bounds = array<i64: 128, 128>}, {pipeline_mode = #tpu.pipeline_mode<synchronous>, transform_indices = @transform_2, window_bounds = array<i64: 1, 128>}, {pipeline_mode = #tpu.pipeline_mode<synchronous>, transform_indices = @transform_3, window_bounds = array<i64: 32, 128>}]} {
    %c0 = arith.constant 0 : index
    %c0_0 = arith.constant 0 : index
    %0 = vector.load %arg1[%c0, %c0_0] : memref<32x128xbf16, #tpu.memory_space<vmem>>, vector<32x128xbf16>
    %c0_1 = arith.constant 0 : index
    %c0_2 = arith.constant 0 : index
    %1 = vector.load %arg2[%c0_1, %c0_2] : memref<128x128xbf16, #tpu.memory_space<vmem>>, vector<128x128xbf16>
    %cst = arith.constant dense<0.000000e+00> : vector<32x128xf32>
    %2 = tpu.matmul %0, %1, %cst {dimension_numbers = #tpu.dot_dimension_numbers<[1], [0], [0], [1], [0, 0, 1, 1], [], []>} : vector<32x128xbf16>, vector<128x128xbf16>, vector<32x128xf32> -> vector<32x128xf32>
    %c0_3 = arith.constant 0 : index
    %c0_4 = arith.constant 0 : index
    %3 = vector.load %arg3[%c0_3, %c0_4] : memref<1x128xf32, #tpu.memory_space<vmem>>, vector<1x128xf32>
    %4 = vector.broadcast %3 : vector<1x128xf32> to vector<32x128xf32>
    %5 = arith.addf %2, %4 : vector<32x128xf32>
    %cst_5 = arith.constant 0.00999999977 : f32
    %6 = vector.broadcast %cst_5 : f32 to vector<32x128xf32>
    %7 = arith.mulf %6, %5 : vector<32x128xf32>
    %8 = arith.maximumf %5, %7 : vector<32x128xf32>
    %c0_6 = arith.constant 0 : index
    %c0_7 = arith.constant 0 : index
    %9 = vector.load %arg4[%c0_6, %c0_7] : memref<32x128xf32, #tpu.memory_space<vmem>>, vector<32x128xf32>
    tpu.vector_store %arg4[%c0_6, %c0_7], %8 {strides = array<i32>} : memref<32x128xf32, #tpu.memory_space<vmem>>, vector<32x128xf32>,
    return
  }
  func.func @transform_0(%arg0: i32) -> (i32, i32) {
    %c0_i32 = arith.constant 0 : i32
    %c0_i32_0 = arith.constant 0 : i32
    %c0_i32_1 = arith.constant 0 : i32
    return %c0_i32, %c0_i32_0 : i32, i32
  }
  func.func @transform_1(%arg0: i32) -> (i32, i32) {
    %c0_i32 = arith.constant 0 : i32
    %c0_i32_0 = arith.constant 0 : i32
    %c0_i32_1 = arith.constant 0 : i32
    return %c0_i32, %c0_i32_0 : i32, i32
  }
  func.func @transform_2(%arg0: i32) -> (i32, i32) {
    %c0_i32 = arith.constant 0 : i32
    %c0_i32_0 = arith.constant 0 : i32
    %c0_i32_1 = arith.constant 0 : i32
    return %c0_i32, %c0_i32_0 : i32, i32
  }
  func.func @transform_3(%arg0: i32) -> (i32, i32) {
    %c0_i32 = arith.constant 0 : i32
    %c0_i32_0 = arith.constant 0 : i32
    %c0_i32_1 = arith.constant 0 : i32
    return %c0_i32, %c0_i32_0 : i32, i32
  }
}

module attributes {stable_mosaic.version = 11 : i64} {
  func.func @_dense_lrelu_kernel(%arg0: i32, %arg1: memref<16x256xbf16, #tpu.memory_space<vmem>>, %arg2: memref<256x128xbf16, #tpu.memory_space<vmem>>, %arg3: memref<1x128xf32, #tpu.memory_space<vmem>>, %arg4: memref<16x128xf32, #tpu.memory_space<vmem>>) attributes {dimension_semantics = [#tpu.dimension_semantics<arbitrary>], iteration_bounds = array<i64: 1>, scalar_prefetch = 0 : i64, scratch_operands = 0 : i64, tpu.core_type = #tpu.core_type<tc>, window_params = [{pipeline_mode = #tpu.pipeline_mode<synchronous>, transform_indices = @transform_0, window_bounds = array<i64: 16, 256>}, {pipeline_mode = #tpu.pipeline_mode<synchronous>, transform_indices = @transform_1, window_bounds = array<i64: 256, 128>}, {pipeline_mode = #tpu.pipeline_mode<synchronous>, transform_indices = @transform_2, window_bounds = array<i64: 1, 128>}, {pipeline_mode = #tpu.pipeline_mode<synchronous>, transform_indices = @transform_3, window_bounds = array<i64: 16, 128>}]} {
    %c0 = arith.constant 0 : index
    %c0_0 = arith.constant 0 : index
    %0 = vector.load %arg1[%c0, %c0_0] : memref<16x256xbf16, #tpu.memory_space<vmem>>, vector<16x256xbf16>
    %c0_1 = arith.constant 0 : index
    %c0_2 = arith.constant 0 : index
    %1 = vector.load %arg2[%c0_1, %c0_2] : memref<256x128xbf16, #tpu.memory_space<vmem>>, vector<256x128xbf16>
    %cst = arith.constant dense<0.000000e+00> : vector<16x128xf32>
    %2 = tpu.matmul %0, %1, %cst {dimension_numbers = #tpu.dot_dimension_numbers<[1], [0], [0], [1], [0, 0, 1, 1], [], []>} : vector<16x256xbf16>, vector<256x128xbf16>, vector<16x128xf32> -> vector<16x128xf32>
    %c0_3 = arith.constant 0 : index
    %c0_4 = arith.constant 0 : index
    %3 = vector.load %arg3[%c0_3, %c0_4] : memref<1x128xf32, #tpu.memory_space<vmem>>, vector<1x128xf32>
    %4 = vector.broadcast %3 : vector<1x128xf32> to vector<16x128xf32>
    %5 = arith.addf %2, %4 : vector<16x128xf32>
    %cst_5 = arith.constant 0.00999999977 : f32
    %6 = vector.broadcast %cst_5 : f32 to vector<16x128xf32>
    %7 = arith.mulf %6, %5 : vector<16x128xf32>
    %8 = arith.maximumf %5, %7 : vector<16x128xf32>
    %c0_6 = arith.constant 0 : index
    %c0_7 = arith.constant 0 : index
    %9 = vector.load %arg4[%c0_6, %c0_7] : memref<16x128xf32, #tpu.memory_space<vmem>>, vector<16x128xf32>
    tpu.vector_store %arg4[%c0_6, %c0_7], %8 {strides = array<i32>} : memref<16x128xf32, #tpu.memory_space<vmem>>, vector<16x128xf32>,
    return
  }
  func.func @transform_0(%arg0: i32) -> (i32, i32) {
    %c0_i32 = arith.constant 0 : i32
    %c0_i32_0 = arith.constant 0 : i32
    %c0_i32_1 = arith.constant 0 : i32
    return %c0_i32, %c0_i32_0 : i32, i32
  }
  func.func @transform_1(%arg0: i32) -> (i32, i32) {
    %c0_i32 = arith.constant 0 : i32
    %c0_i32_0 = arith.constant 0 : i32
    %c0_i32_1 = arith.constant 0 : i32
    return %c0_i32, %c0_i32_0 : i32, i32
  }
  func.func @transform_2(%arg0: i32) -> (i32, i32) {
    %c0_i32 = arith.constant 0 : i32
    %c0_i32_0 = arith.constant 0 : i32
    %c0_i32_1 = arith.constant 0 : i32
    return %c0_i32, %c0_i32_0 : i32, i32
  }
  func.func @transform_3(%arg0: i32) -> (i32, i32) {
    %c0_i32 = arith.constant 0 : i32
    %c0_i32_0 = arith.constant 0 : i32
    %c0_i32_1 = arith.constant 0 : i32
    return %c0_i32, %c0_i32_0 : i32, i32
  }
}

</mosaic_0001>

<bundles_post_ra>
// kernel: feature_extractor_forward.3
= control target key start
LH: loop header
LB: loop body
LE: loop exit
PB: predicated region body
PF: predicated region fallthrough
CT: control target
= control target key end

     0   :  { %v385_v0 = vmov 0.0   ;;  %vm386_vm0 = vmmov 0   ;;  %s520_s1 = inlined_call_operand.vmem [shape: bf16[128,128], index: 1, kind: input, shape index: {}]   ;;  %s521_s0 = inlined_call_operand.vmem [shape: bf16[112,128], index: 0, kind: input, shape index: {}]   ;;  %s522_s2 = inlined_call_operand.vmem [shape: f32[1,128], index: 2, kind: input, shape index: {}]   ;;  %s523_s3 = inlined_call_operand.vmem [shape: f32[112,128], index: 3, kind: output, shape index: {}]  }
   0x1   :  { %308 = vmatprep.subr.bf16.mxu0 %v385_v0  ;;  %v370_v1 = vld [vmem:[%s520_s1] sm:$0xff]   ;;  %352 = vmatprep.subr.bf16.mxu1 %v385_v0  ;;  %v371_v2 = vld [vmem:[%s520_s1 + $0x8] sm:$0xff]   ;;  %v372_v3 = vld [vmem:[%s520_s1 + $0x10] sm:$0xff]  }
   0x2   :  { %324 = vmatprep.mubr.msk.bf16.mxu0 %vm386_vm0, %v385_v0  ;;  %340 = vmatprep.mubr.msk.bf16.mxu1 %vm386_vm0, %v385_v0  ;;  %v373_v4 = vld [vmem:[%s520_s1 + $0x18] sm:$0xff]   ;;  %v374_v5 = vld [vmem:[%s520_s1 + $0x20] sm:$0xff]   ;;  %v375_v6 = vld [vmem:[%s520_s1 + $0x28] sm:$0xff]  }
   0x3   :  { %309 = vmatpush3.bf16.msra.mxu0 %v370_v1  ;;  %360 = vmatpush3.bf16.msra.mxu1 %v370_v1  ;;  %v376_v7 = vld [vmem:[%s520_s1 + $0x30] sm:$0xff]   ;;  %v377_v8 = vld [vmem:[%s520_s1 + $0x38] sm:$0xff]   ;;  %v378_v9 = vld [vmem:[%s521_s0] sm:$0xff]  }
   0x4   :  { %310 = vmatprep.subr.bf16.mxu0 %v385_v0  ;;  %353 = vmatprep.subr.bf16.mxu1 %v385_v0  ;;  %v379_v10 = vld [vmem:[%s521_s0 + $0x20] sm:$0xff]   ;;  %v380_v11 = vld [vmem:[%s521_s0 + $0x8] sm:$0xff]   ;;  %v382_v13 = vld [vmem:[%s521_s0 + $0x10] sm:$0xff]  }
   0x5   :  { %v381_v12 = vld [vmem:[%s521_s0 + $0x28] sm:$0xff]   ;;  %v383_v14 = vld [vmem:[%s521_s0 + $0x30] sm:$0xff]   ;;  %v384_v15 = vld [vmem:[%s521_s0 + $0x18] sm:$0xff]  }
   0x6   :  { %v462_v16 = vld [vmem:[%s522_s2] ss:$0 sm:$0xff] }
   0x7   :  { %311 = vmatpush3.bf16.msra.mxu0 %v371_v2  ;;  %361 = vmatpush3.bf16.msra.mxu1 %v371_v2 }
   0x8   :  { %312 = vmatprep.subr.bf16.mxu0 %v385_v0  ;;  %354 = vmatprep.subr.bf16.mxu1 %v385_v0 }
   0xb   :  { %313 = vmatpush3.bf16.msra.mxu0 %v372_v3  ;;  %362 = vmatpush3.bf16.msra.mxu1 %v372_v3 }
   0xc   :  { %314 = vmatprep.subr.bf16.mxu0 %v385_v0  ;;  %355 = vmatprep.subr.bf16.mxu1 %v385_v0 }
   0xf   :  { %315 = vmatpush3.bf16.msra.mxu0 %v373_v4  ;;  %363 = vmatpush3.bf16.msra.mxu1 %v373_v4 }
  0x10   :  { %316 = vmatprep.subr.bf16.mxu0 %v385_v0  ;;  %356 = vmatprep.subr.bf16.mxu1 %v385_v0 }
  0x13   :  { %317 = vmatpush3.bf16.msra.mxu0 %v374_v5  ;;  %364 = vmatpush3.bf16.msra.mxu1 %v374_v5 }
  0x14   :  { %318 = vmatprep.subr.bf16.mxu0 %v385_v0  ;;  %357 = vmatprep.subr.bf16.mxu1 %v385_v0 }
  0x17   :  { %319 = vmatpush3.bf16.msra.mxu0 %v375_v6  ;;  %365 = vmatpush3.bf16.msra.mxu1 %v375_v6 }
  0x18   :  { %320 = vmatprep.subr.bf16.mxu0 %v385_v0  ;;  %358 = vmatprep.subr.bf16.mxu1 %v385_v0 }
  0x1b   :  { %321 = vmatpush3.bf16.msra.mxu0 %v376_v7  ;;  %366 = vmatpush3.bf16.msra.mxu1 %v376_v7 }
  0x1c   :  { %322 = vmatprep.subr.bf16.mxu0 %v385_v0  ;;  %359 = vmatprep.subr.bf16.mxu1 %v385_v0 }
  0x1f   :  { %323 = vmatpush3.bf16.msra.mxu0 %v377_v8  ;;  %367 = vmatpush3.bf16.msra.mxu1 %v377_v8 }
  0x22   :  { %325 = vmatmul.mubr.bf16.vlgmr.msra.gmra.mrb[0].mxu0 %v378_v9  ;;  %341 = vmatmul.mubr.bf16.vlgmr.msra.gmra.mrb[0].mxu1 %v379_v10 }
  0x23   :  { %328 = vmatprep.mubr.msk.bf16.mxu0 %vm386_vm0, %v385_v0  ;;  %344 = vmatprep.mubr.msk.bf16.mxu1 %vm386_vm0, %v385_v0 }
  0x2a   :  { %329 = vmatmul.mubr.bf16.gmra.mrb[4].mxu0 %v380_v11  ;;  %345 = vmatmul.mubr.bf16.gmra.mrb[4].mxu1 %v381_v12 }
  0x2b   :  { %332 = vmatprep.mubr.msk.bf16.mxu0 %vm386_vm0, %v385_v0  ;;  %348 = vmatprep.mubr.msk.bf16.mxu1 %vm386_vm0, %v385_v0 }
  0x32   :  { %333 = vmatmul.mubr.bf16.gmra.mrb[8].mxu0 %v382_v13  ;;  %349 = vmatmul.mubr.bf16.gmra.mrb[8].mxu1 %v383_v14 }
  0x33   :  { %336 = vmatprep.mubr.msk.bf16.mxu0 %vm386_vm0, %v385_v0 }
  0x3a   :  { %337 = vmatmul.mubr.bf16.gmra.mrb[12].mxu0 %v384_v15 }
  0xf5   :  { %v176_v17 = vpop.f32.mrb[0].mxu0  ;;  %v208_v18 = vpop.f32.mrb[0].mxu1 }
  0xf6   :  { %v177_v19 = vadd.f32 %v462_v16, %v176_v17  ;;  %v326_v20 = vpop.f32.mrb[1].mxu0  ;;  %v209_v21 = vadd.f32 %v462_v16, %v208_v18  ;;  %v342_v22 = vpop.f32.mrb[1].mxu1 }
  0xf7   :  { %v179_v23 = vpop.f32.mrb[2].mxu0  ;;  %v211_v24 = vpop.f32.mrb[2].mxu1 }
  0xf8   :  { %v231_v25 = vmul.f32 0.01, %v177_v19  ;;  %v180_v26 = vadd.f32 %v462_v16, %v179_v23  ;;  %v327_v27 = vpop.f32.mrb[3].mxu0  ;;  %v239_v28 = vmul.f32 0.01, %v209_v21  ;;  %v212_v29 = vadd.f32 %v462_v16, %v211_v24  ;;  %v343_v30 = vpop.f32.mrb[3].mxu1 }
  0xfa   :  { %v245_v31 = vmax.f32 %v177_v19, %v231_v25  ;;  %v232_v32 = vmul.f32 0.01, %v180_v26  ;;  %v253_v33 = vmax.f32 %v209_v21, %v239_v28  ;;  %v240_v34 = vmul.f32 0.01, %v212_v29 }
  0xfc   :  { %259 = vst [vmem:[%s523_s3] sm:$0xff] %v245_v31  ;;  %v246_v35 = vmax.f32 %v180_v26, %v232_v32  ;;  %267 = vst [vmem:[%s523_s3 + $0x40] sm:$0xff] %v253_v33  ;;  %v254_v36 = vmax.f32 %v212_v29, %v240_v34 }
  0xfd   :  { %v184_v37 = vpop.f32.mrb[4].mxu0  ;;  %v216_v38 = vpop.f32.mrb[4].mxu1 }
  0xfe   :  { %260 = vst [vmem:[%s523_s3 + $0x8] sm:$0xff] %v246_v35  ;;  %268 = vst [vmem:[%s523_s3 + $0x48] sm:$0xff] %v254_v36  ;;  %v185_v39 = vadd.f32 %v462_v16, %v184_v37  ;;  %v330_v40 = vpop.f32.mrb[5].mxu0  ;;  %v217_v41 = vadd.f32 %v462_v16, %v216_v38  ;;  %v346_v42 = vpop.f32.mrb[5].mxu1 }
  0xff   :  { %v187_v43 = vpop.f32.mrb[6].mxu0  ;;  %v219_v44 = vpop.f32.mrb[6].mxu1 }
 0x100   :  { %v233_v45 = vmul.f32 0.01, %v185_v39  ;;  %v188_v46 = vadd.f32 %v462_v16, %v187_v43  ;;  %v331_v47 = vpop.f32.mrb[7].mxu0  ;;  %v241_v48 = vmul.f32 0.01, %v217_v41  ;;  %v220_v49 = vadd.f32 %v462_v16, %v219_v44  ;;  %v347_v50 = vpop.f32.mrb[7].mxu1 }
 0x102   :  { %v247_v51 = vmax.f32 %v185_v39, %v233_v45  ;;  %v234_v52 = vmul.f32 0.01, %v188_v46  ;;  %v255_v53 = vmax.f32 %v217_v41, %v241_v48  ;;  %v242_v54 = vmul.f32 0.01, %v220_v49 }
 0x104   :  { %261 = vst [vmem:[%s523_s3 + $0x10] sm:$0xff] %v247_v51  ;;  %v248_v55 = vmax.f32 %v188_v46, %v234_v52  ;;  %269 = vst [vmem:[%s523_s3 + $0x50] sm:$0xff] %v255_v53  ;;  %v256_v56 = vmax.f32 %v220_v49, %v242_v54 }
 0x105   :  { %v192_v57 = vpop.f32.mrb[8].mxu0  ;;  %v224_v58 = vpop.f32.mrb[8].mxu1 }
 0x106   :  { %262 = vst [vmem:[%s523_s3 + $0x18] sm:$0xff] %v248_v55  ;;  %270 = vst [vmem:[%s523_s3 + $0x58] sm:$0xff] %v256_v56  ;;  %v193_v59 = vadd.f32 %v462_v16, %v192_v57  ;;  %v334_v60 = vpop.f32.mrb[9].mxu0  ;;  %v225_v61 = vadd.f32 %v462_v16, %v224_v58  ;;  %v350_v62 = vpop.f32.mrb[9].mxu1 }
 0x107   :  { %v195_v63 = vpop.f32.mrb[10].mxu0  ;;  %v227_v0 = vpop.f32.mrb[10].mxu1 }
 0x108   :  { %v235_v1 = vmul.f32 0.01, %v193_v59  ;;  %v196_v2 = vadd.f32 %v462_v16, %v195_v63  ;;  %v335_v3 = vpop.f32.mrb[11].mxu0  ;;  %v243_v4 = vmul.f32 0.01, %v225_v61  ;;  %v228_v5 = vadd.f32 %v462_v16, %v227_v0  ;;  %v351_v6 = vpop.f32.mrb[11].mxu1 }
 0x10a   :  { %v249_v7 = vmax.f32 %v193_v59, %v235_v1  ;;  %v236_v8 = vmul.f32 0.01, %v196_v2  ;;  %v257_v9 = vmax.f32 %v225_v61, %v243_v4  ;;  %v244_v10 = vmul.f32 0.01, %v228_v5 }
 0x10c   :  { %263 = vst [vmem:[%s523_s3 + $0x20] sm:$0xff] %v249_v7  ;;  %v250_v11 = vmax.f32 %v196_v2, %v236_v8  ;;  %271 = vst [vmem:[%s523_s3 + $0x60] sm:$0xff] %v257_v9  ;;  %v258_v12 = vmax.f32 %v228_v5, %v244_v10 }
 0x10d   :  { %v200_v13 = vpop.f32.mrb[12].mxu0 }
 0x10e   :  { %264 = vst [vmem:[%s523_s3 + $0x28] sm:$0xff] %v250_v11  ;;  %272 = vst [vmem:[%s523_s3 + $0x68] sm:$0xff] %v258_v12  ;;  %v201_v14 = vadd.f32 %v462_v16, %v200_v13  ;;  %v338_v15 = vpop.f32.mrb[13].mxu0 }
 0x10f   :  { %v203_v17 = vpop.f32.mrb[14].mxu0 }
 0x110   :  { %v237_v18 = vmul.f32 0.01, %v201_v14  ;;  %v204_v19 = vadd.f32 %v462_v16, %v203_v17  ;;  %v339_v20 = vpop.f32.mrb[15].mxu0 }
 0x112   :  { %v251_v21 = vmax.f32 %v201_v14, %v237_v18  ;;  %v238_v22 = vmul.f32 0.01, %v204_v19 }
 0x114   :  { %265 = vst [vmem:[%s523_s3 + $0x30] sm:$0xff] %v251_v21  ;;  %v252_v23 = vmax.f32 %v204_v19, %v238_v22 }
 0x116   :  { %266 = vst [vmem:[%s523_s3 + $0x38] sm:$0xff] %v252_v23 }

// kernel: feature_extractor_forward.4
= control target key start
LH: loop header
LB: loop body
LE: loop exit
PB: predicated region body
PF: predicated region fallthrough
CT: control target
= control target key end

     0   :  { %s283_s1 = inlined_call_operand.vmem [shape: bf16[128,128], index: 1, kind: input, shape index: {}]   ;;  %s284_s0 = inlined_call_operand.vmem [shape: bf16[32,128], index: 0, kind: input, shape index: {}]   ;;  %s285_s2 = inlined_call_operand.vmem [shape: f32[1,128], index: 2, kind: input, shape index: {}]   ;;  %s286_s3 = inlined_call_operand.vmem [shape: f32[32,128], index: 3, kind: output, shape index: {}]  }
   0x1   :  { %v208_v0 = vld [vmem:[%s283_s1] sm:$0xff]   ;;  %v209_v1 = vld [vmem:[%s283_s1 + $0x8] sm:$0xff]   ;;  %v210_v2 = vld [vmem:[%s283_s1 + $0x10] sm:$0xff]  }
   0x2   :  { %188 = vmatprep.subr.bf16.mxu0 %v208_v0  ;;  %v211_v3 = vld [vmem:[%s283_s1 + $0x18] sm:$0xff]   ;;  %v216_v4 = vld [vmem:[%s284_s0] sm:$0xff]   ;;  %v213_v6 = vld [vmem:[%s283_s1 + $0x28] sm:$0xff]  }
   0x3   :  { %189 = vmatpush3.bf16.msra.mxu0 %v208_v0  ;;  %204 = vmatprep.mubr.bf16.mxu0 %v216_v4  ;;  %v212_v5 = vld [vmem:[%s283_s1 + $0x20] sm:$0xff]   ;;  %v214_v7 = vld [vmem:[%s283_s1 + $0x30] sm:$0xff]   ;;  %v215_v8 = vld [vmem:[%s283_s1 + $0x38] sm:$0xff]  }
   0x4   :  { %190 = vmatprep.subr.bf16.mxu0 %v209_v1  ;;  %v217_v9 = vld [vmem:[%s284_s0 + $0x8] sm:$0xff]   ;;  %v167_v10 = vld [vmem:[%s285_s2] ss:$0 sm:$0xff] }
   0x7   :  { %191 = vmatpush3.bf16.msra.mxu0 %v209_v1 }
   0x8   :  { %192 = vmatprep.subr.bf16.mxu0 %v210_v2 }
   0xb   :  { %193 = vmatpush3.bf16.msra.mxu0 %v210_v2 }
   0xc   :  { %194 = vmatprep.subr.bf16.mxu0 %v211_v3 }
   0xf   :  { %195 = vmatpush3.bf16.msra.mxu0 %v211_v3 }
  0x10   :  { %196 = vmatprep.subr.bf16.mxu0 %v212_v5 }
  0x13   :  { %197 = vmatpush3.bf16.msra.mxu0 %v212_v5 }
  0x14   :  { %198 = vmatprep.subr.bf16.mxu0 %v213_v6 }
  0x17   :  { %199 = vmatpush3.bf16.msra.mxu0 %v213_v6 }
  0x18   :  { %200 = vmatprep.subr.bf16.mxu0 %v214_v7 }
  0x1b   :  { %201 = vmatpush3.bf16.msra.mxu0 %v214_v7 }
  0x1c   :  { %202 = vmatprep.subr.bf16.mxu0 %v215_v8 }
  0x1f   :  { %203 = vmatpush3.bf16.msra.mxu0 %v215_v8 }
  0x22   :  { %205 = vmatmul.mubr.bf16.vlgmr.msra.gmra.mrb[0].mxu0 %v217_v9 }
  0xf5   :  { %v206_v11 = vpop.f32.mrb[0].mxu0 }
  0xf6   :  { %v145_v12 = vadd.f32 %v206_v11, %v167_v10  ;;  %v136_v13 = vpop.f32.mrb[1].mxu0 }
  0xf7   :  { %v137_v14 = vadd.f32 %v167_v10, %v136_v13  ;;  %v207_v15 = vpop.f32.mrb[2].mxu0 }
  0xf8   :  { %v153_v16 = vmul.f32 0.01, %v145_v12  ;;  %v148_v17 = vadd.f32 %v207_v15, %v167_v10  ;;  %v139_v18 = vpop.f32.mrb[3].mxu0 }
  0xf9   :  { %v151_v19 = vmul.f32 0.01, %v137_v14  ;;  %v140_v20 = vadd.f32 %v167_v10, %v139_v18 }
  0xfa   :  { %v157_v21 = vmax.f32 %v145_v12, %v153_v16  ;;  %v154_v22 = vmul.f32 0.01, %v148_v17 }
  0xfb   :  { %v155_v23 = vmax.f32 %v137_v14, %v151_v19  ;;  %v152_v24 = vmul.f32 0.01, %v140_v20 }
  0xfc   :  { %161 = vst [vmem:[%s286_s3 + $0x10] sm:$0xff] %v157_v21  ;;  %v158_v25 = vmax.f32 %v148_v17, %v154_v22 }
  0xfd   :  { %159 = vst [vmem:[%s286_s3] sm:$0xff] %v155_v23  ;;  %v156_v26 = vmax.f32 %v140_v20, %v152_v24 }
  0xfe   :  { %162 = vst [vmem:[%s286_s3 + $0x18] sm:$0xff] %v158_v25 }
  0xff   :  { %160 = vst [vmem:[%s286_s3 + $0x8] sm:$0xff] %v156_v26 }

// kernel: feature_extractor_forward.5
= control target key start
LH: loop header
LB: loop body
LE: loop exit
PB: predicated region body
PF: predicated region fallthrough
CT: control target
= control target key end

     0   :  { %s356_s1 = inlined_call_operand.vmem [shape: bf16[256,128], index: 1, kind: input, shape index: {}]   ;;  %s357_s0 = inlined_call_operand.vmem [shape: bf16[16,256], index: 0, kind: input, shape index: {}]   ;;  %s358_s2 = inlined_call_operand.vmem [shape: f32[1,128], index: 2, kind: input, shape index: {}]   ;;  %s359_s3 = inlined_call_operand.vmem [shape: f32[16,128], index: 3, kind: output, shape index: {}]  }
   0x1   :  { %v254_v0 = vld [vmem:[%s356_s1 + $0x40] sm:$0xff]   ;;  %v256_v2 = vld [vmem:[%s356_s1 + $0x48] sm:$0xff]   ;;  %v258_v4 = vld [vmem:[%s356_s1 + $0x50] sm:$0xff]  }
   0x2   :  { %v255_v1 = vld [vmem:[%s356_s1] sm:$0xff]   ;;  %232 = vmatprep.subr.bf16.mxu0 %v254_v0  ;;  %v257_v3 = vld [vmem:[%s356_s1 + $0x8] sm:$0xff]   ;;  %v259_v5 = vld [vmem:[%s356_s1 + $0x10] sm:$0xff]  }
   0x3   :  { %233 = vmatpush3.bf16.msra.mxu0 %v255_v1  ;;  %v260_v6 = vld [vmem:[%s356_s1 + $0x58] sm:$0xff]   ;;  %v262_v8 = vld [vmem:[%s356_s1 + $0x60] sm:$0xff]   ;;  %v264_v10 = vld [vmem:[%s356_s1 + $0x68] sm:$0xff]  }
   0x4   :  { %234 = vmatprep.subr.bf16.mxu0 %v256_v2  ;;  %v261_v7 = vld [vmem:[%s356_s1 + $0x18] sm:$0xff]   ;;  %v263_v9 = vld [vmem:[%s356_s1 + $0x20] sm:$0xff]   ;;  %v265_v12 = vld [vmem:[%s356_s1 + $0x28] sm:$0xff]  }
   0x5   :  { %v272_v11 = vld [vmem:[%s357_s0 + $0x4] ss:$8 sps:$4 sm:$0xff]   ;;  %v266_v13 = vld [vmem:[%s356_s1 + $0x70] sm:$0xff]   ;;  %v268_v15 = vld [vmem:[%s356_s1 + $0x78] sm:$0xff]  }
   0x6   :  { %194 = vmatprep.mubr.bf16.mxu0 %v272_v11  ;;  %v267_v14 = vld [vmem:[%s356_s1 + $0x30] sm:$0xff]   ;;  %v269_v16 = vld [vmem:[%s356_s1 + $0x38] sm:$0xff]   ;;  %v270_v17 = vld [vmem:[%s357_s0] ss:$8 sps:$4 sm:$0xff]  }
   0x7   :  { %235 = vmatpush3.bf16.msra.mxu0 %v257_v3  ;;  %v213_v19 = vld [vmem:[%s358_s2] ss:$0 sm:$0xff] }
   0x8   :  { %236 = vmatprep.subr.bf16.mxu0 %v258_v4 }
   0xb   :  { %237 = vmatpush3.bf16.msra.mxu0 %v259_v5 }
   0xc   :  { %238 = vmatprep.subr.bf16.mxu0 %v260_v6 }
   0xf   :  { %239 = vmatpush3.bf16.msra.mxu0 %v261_v7 }
  0x10   :  { %240 = vmatprep.subr.bf16.mxu0 %v262_v8 }
  0x13   :  { %241 = vmatpush3.bf16.msra.mxu0 %v263_v9 }
  0x14   :  { %242 = vmatprep.subr.bf16.mxu0 %v264_v10 }
  0x17   :  { %243 = vmatpush3.bf16.msra.mxu0 %v265_v12 }
  0x18   :  { %244 = vmatprep.subr.bf16.mxu0 %v266_v13 }
  0x1b   :  { %245 = vmatpush3.bf16.msra.mxu0 %v267_v14 }
  0x1c   :  { %246 = vmatprep.subr.bf16.mxu0 %v268_v15 }
  0x1f   :  { %247 = vmatpush3.bf16.msra.mxu0 %v269_v16 }
  0x22   :  { %195 = vmatmul.mubr.bf16.vlgmr.msra.gmra.mrb[0].mxu0 %v270_v17 }
  0xf5   :  { %v248_v18 = vpop.f32.mrb[0].mxu0 }
  0xf6   :  { %v249_v20 = vpop.f32.mrb[1].mxu0 }
  0xf7   :  { %v250_v21 = vadd.f32 %v249_v20, %v248_v18  ;;  %v251_v22 = vpop.f32.mrb[2].mxu0 }
  0xf8   :  { %v252_v23 = vpop.f32.mrb[3].mxu0 }
  0xf9   :  { %v197_v24 = vadd.f32 %v250_v21, %v213_v19  ;;  %v253_v25 = vadd.f32 %v252_v23, %v251_v22 }
  0xfb   :  { %v203_v26 = vmul.f32 0.01, %v197_v24  ;;  %v200_v27 = vadd.f32 %v253_v25, %v213_v19 }
  0xfd   :  { %v205_v28 = vmax.f32 %v197_v24, %v203_v26  ;;  %v204_v29 = vmul.f32 0.01, %v200_v27 }
  0xff   :  { %207 = vst [vmem:[%s359_s3] sm:$0xff] %v205_v28  ;;  %v206_v30 = vmax.f32 %v200_v27, %v204_v29 }
 0x101   :  { %208 = vst [vmem:[%s359_s3 + $0x8] sm:$0xff] %v206_v30 }

</bundles_post_ra>
